<compile_context>
chip_gen: v5e
topology: v5e:2x2
jax: 0.10.0
libtpu: 0.0.40
codegen_flags: <defaults>
</compile_context>

<pallas_src>
import functools
import math

import jax
import jax.numpy as jnp
from jax.experimental import pallas as pl
from jax.experimental.pallas import tpu as pltpu

EPS = 1e-5


# ---------------------------------------------------------------------------
# Pass 1: depthwise 3x3 conv (pad=1 via in-kernel VMEM halo slab)
#         + per-tile sum / sum-of-squares partials for BatchNorm #1.
# Folded layout: activations are (H, W*C_in) with W*C_in on the lane axis.
# ---------------------------------------------------------------------------
def _dw_conv_kernel(x_ref, wdw_ref, dw_ref, stats_ref, pad_ref, *, c_in):
    H = x_ref.shape[1]
    WC = x_ref.shape[2]                                  # W * C_in

    # Build the zero-padded slab in VMEM (no jnp.pad HBM round trip).
    pad_ref[...] = jnp.zeros_like(pad_ref)
    pad_ref[1:H + 1, c_in:c_in + WC] = x_ref[0].astype(jnp.float32)

    # Hoisted weight load: (9, W*C_in), taps already broadcast across W.
    wdw = wdw_ref[...].astype(jnp.float32)

    # Three W-shifted operands generated once, reused across the 3 kh rows
    # (3 shifted slabs instead of 9 separately sliced views).
    xw = [pad_ref[:, kw * c_in:kw * c_in + WC] for kw in range(3)]

    acc = jnp.zeros((H, WC), jnp.float32)
    for kh in range(3):
        for kw in range(3):
            k = 3 * kh + kw
            tap = wdw[k:k + 1, :]                        # (1, W*C_in)
            acc = acc + xw[kw][kh:kh + H, :] * tap

    dw_ref[0] = acc

    # Single-pass BN stats: per-(w, c) lane partials over this tile's rows;
    # the tiny cross-tile / cross-W reduction happens in JAX.
    stats_ref[0, 0:1, :] = jnp.sum(acc, axis=0, keepdims=True)
    stats_ref[0, 1:2, :] = jnp.sum(acc * acc, axis=0, keepdims=True)


# ---------------------------------------------------------------------------
# Pass 2: BN1 (precomputed scale/shift) + ReLU + pointwise 1x1 conv as a
#         lane-dense MXU matmul (block-diagonal weight, bf16 in / f32 acc)
#         + per-tile partials for BatchNorm #2.
# ---------------------------------------------------------------------------
def _pw_conv_kernel(dw_ref, scale1_ref, shift1_ref, wbig_ref, z_ref, stats_ref):
    y = dw_ref[0] * scale1_ref[...] + shift1_ref[...]
    y = jnp.maximum(y, 0.0)
    z = jnp.dot(y.astype(jnp.bfloat16), wbig_ref[...],
                preferred_element_type=jnp.float32)       # (H, W*C_out)
    z_ref[0] = z
    stats_ref[0, 0:1, :] = jnp.sum(z, axis=0, keepdims=True)
    stats_ref[0, 1:2, :] = jnp.sum(z * z, axis=0, keepdims=True)


# ---------------------------------------------------------------------------
# Pass 3: BN2 (precomputed scale/shift) + ReLU, fully lane-dense store.
# ---------------------------------------------------------------------------
def _bn2_relu_kernel(z_ref, scale2_ref, shift2_ref, out_ref):
    out_ref[0] = jnp.maximum(z_ref[0] * scale2_ref[...] + shift2_ref[...], 0.0)


def block_forward(x_nchw, params):
    """x_nchw: (N, C_in, H, W) float32 (PyTorch layout). Returns (N, C_out, H, W)."""
    w_dw, g1, b1, w_pw, g2, b2 = params
    N, C_in, H, W = x_nchw.shape
    C_out = w_pw.shape[1]
    WC_in, WC_out = W * C_in, W * C_out
    count = N * H * W

    # NHWC with W folded into the lane axis (contiguous reshape, no copy).
    x = jnp.transpose(x_nchw, (0, 2, 3, 1)).reshape(N, H, WC_in)

    # Depthwise taps broadcast across W: (9, C_in) -> (9, W*C_in).
    wdw_f = jnp.tile(w_dw[:, None, :], (1, W, 1)).reshape(9, WC_in)
    # Block-diagonal expansion of the 1x1 conv so the matmul stays in the
    # folded lane-dense layout: (W*C_in, W*C_out), bf16 for the MXU.
    w_big = jnp.kron(jnp.eye(W, dtype=w_pw.dtype), w_pw).astype(jnp.bfloat16)

    cparams = pltpu.CompilerParams(
        dimension_semantics=("parallel",),        # shard grid across v7x's 2 TCs
        vmem_limit_bytes=32 * 1024 * 1024)        # explicit VMEM budget (v5e/v7x safe)

    # ------------------------- pass 1: depthwise conv -----------------------
    flops1 = N * H * W * C_in * (2 * 9 + 3)
    bytes1 = 4 * (2 * N * H * WC_in + 9 * WC_in + N * 2 * WC_in)
    dw, stats1 = pl.pallas_call(
        functools.partial(_dw_conv_kernel, c_in=C_in),
        out_shape=(jax.ShapeDtypeStruct((N, H, WC_in), jnp.float32),
                   jax.ShapeDtypeStruct((N, 2, WC_in), jnp.float32)),
        grid_spec=pltpu.PrefetchScalarGridSpec(
            num_scalar_prefetch=0,
            grid=(N,),
            in_specs=[
                pl.BlockSpec((1, H, WC_in), lambda i: (i, 0, 0)),
                pl.BlockSpec((9, WC_in), lambda i: (0, 0)),
            ],
            out_specs=[
                pl.BlockSpec((1, H, WC_in), lambda i: (i, 0, 0)),
                pl.BlockSpec((1, 2, WC_in), lambda i: (i, 0, 0)),
            ],
            scratch_shapes=[pltpu.VMEM((H + 2, (W + 2) * C_in), jnp.float32)],
        ),
        compiler_params=cparams,
        cost_estimate=pl.CostEstimate(flops=flops1, transcendentals=0,
                                      bytes_accessed=bytes1),
    )(x, wdw_f)

    # BN1 scale/shift from streamed partials (tiny per-channel reduction, f32).
    s1 = stats1[:, 0, :].reshape(N, W, C_in).sum(axis=(0, 1))
    q1 = stats1[:, 1, :].reshape(N, W, C_in).sum(axis=(0, 1))
    mean1 = s1 / count
    var1 = jnp.maximum(q1 / count - mean1 * mean1, 0.0)   # biased variance
    scale1 = g1 * jax.lax.rsqrt(var1 + EPS)
    shift1 = b1 - mean1 * scale1
    scale1_f = jnp.tile(scale1, W).reshape(1, WC_in)
    shift1_f = jnp.tile(shift1, W).reshape(1, WC_in)

    # --------------- pass 2: BN1 + ReLU + pointwise (MXU matmul) ------------
    flops2 = N * H * (3 * WC_in + 2 * WC_in * WC_out + 3 * WC_out)
    bytes2 = (4 * (N * H * WC_in + 2 * WC_in + N * H * WC_out + N * 2 * WC_out)
              + 2 * WC_in * WC_out)
    z, stats2 = pl.pallas_call(
        _pw_conv_kernel,
        out_shape=(jax.ShapeDtypeStruct((N, H, WC_out), jnp.float32),
                   jax.ShapeDtypeStruct((N, 2, WC_out), jnp.float32)),
        grid_spec=pltpu.PrefetchScalarGridSpec(
            num_scalar_prefetch=0,
            grid=(N,),
            in_specs=[
                pl.BlockSpec((1, H, WC_in), lambda i: (i, 0, 0)),
                pl.BlockSpec((1, WC_in), lambda i: (0, 0)),
                pl.BlockSpec((1, WC_in), lambda i: (0, 0)),
                pl.BlockSpec((WC_in, WC_out), lambda i: (0, 0)),
            ],
            out_specs=[
                pl.BlockSpec((1, H, WC_out), lambda i: (i, 0, 0)),
                pl.BlockSpec((1, 2, WC_out), lambda i: (i, 0, 0)),
            ],
        ),
        compiler_params=cparams,
        cost_estimate=pl.CostEstimate(flops=flops2, transcendentals=0,
                                      bytes_accessed=bytes2),
    )(dw, scale1_f, shift1_f, w_big)

    s2 = stats2[:, 0, :].reshape(N, W, C_out).sum(axis=(0, 1))
    q2 = stats2[:, 1, :].reshape(N, W, C_out).sum(axis=(0, 1))
    mean2 = s2 / count
    var2 = jnp.maximum(q2 / count - mean2 * mean2, 0.0)
    scale2 = g2 * jax.lax.rsqrt(var2 + EPS)
    shift2 = b2 - mean2 * scale2
    scale2_f = jnp.tile(scale2, W).reshape(1, WC_out)
    shift2_f = jnp.tile(shift2, W).reshape(1, WC_out)

    # ----------------------- pass 3: BN2 + ReLU -----------------------------
    flops3 = 3 * N * H * WC_out
    bytes3 = 4 * (2 * N * H * WC_out + 2 * WC_out)
    out_f = pl.pallas_call(
        _bn2_relu_kernel,
        out_shape=jax.ShapeDtypeStruct((N, H, WC_out), jnp.float32),
        grid_spec=pltpu.PrefetchScalarGridSpec(
            num_scalar_prefetch=0,
            grid=(N,),
            in_specs=[
                pl.BlockSpec((1, H, WC_out), lambda i: (i, 0, 0)),
                pl.BlockSpec((1, WC_out), lambda i: (0, 0)),
                pl.BlockSpec((1, WC_out), lambda i: (0, 0)),
            ],
            out_specs=pl.BlockSpec((1, H, WC_out), lambda i: (i, 0, 0)),
        ),
        compiler_params=cparams,
        cost_estimate=pl.CostEstimate(flops=flops3, transcendentals=0,
                                      bytes_accessed=bytes3),
    )(z, scale2_f, shift2_f)

    # Unfold and return in PyTorch NCHW layout.
    return jnp.transpose(out_f.reshape(N, H, W, C_out), (0, 3, 1, 2))


def _block_reference(x_nchw, params):
    """Pure-JAX f32 reference of the Block forward (training-mode BN)."""
    w_dw, g1, b1, w_pw, g2, b2 = params
    N, C_in, H, W = x_nchw.shape
    x = jnp.transpose(x_nchw, (0, 2, 3, 1))
    xp = jnp.pad(x, ((0, 0), (1, 1), (1, 1), (0, 0)))
    acc = jnp.zeros((N, H, W, C_in), jnp.float32)
    for kh in range(3):
        for kw in range(3):
            acc = acc + xp[:, kh:kh + H, kw:kw + W, :] * w_dw[3 * kh + kw]
    m1 = acc.mean(axis=(0, 1, 2))
    v1 = acc.var(axis=(0, 1, 2))
    y = jnp.maximum((acc - m1) * jax.lax.rsqrt(v1 + EPS) * g1 + b1, 0.0)
    z = jnp.einsum('nhwc,cd->nhwd', y, w_pw)
    m2 = z.mean(axis=(0, 1, 2))
    v2 = z.var(axis=(0, 1, 2))
    out = jnp.maximum((z - m2) * jax.lax.rsqrt(v2 + EPS) * g2 + b2, 0.0)
    return jnp.transpose(out, (0, 3, 1, 2))


def init_params(key, C_in, C_out):
    """Deterministic synthetic parameters (shapes from Block.__init__)."""
    k1, k2, k3, k4, k5, k6 = jax.random.split(key, 6)
    # depthwise conv weight: torch (C_in, 1, 3, 3) -> taps (9, C_in), k = 3*kh + kw
    bound_dw = 1.0 / math.sqrt(9.0)
    w_dw = jax.random.uniform(k1, (9, C_in), jnp.float32, -bound_dw, bound_dw)
    # pointwise conv weight: torch (C_out, C_in, 1, 1) -> stored as (C_in, C_out)
    bound_pw = 1.0 / math.sqrt(C_in)
    w_pw = jax.random.uniform(k2, (C_in, C_out), jnp.float32, -bound_pw, bound_pw)
    # BatchNorm affine params (torch default gamma=1, beta=0; perturbed so the
    # test is non-trivial)
    g1 = 1.0 + 0.1 * jax.random.normal(k3, (C_in,), jnp.float32)
    b1 = 0.1 * jax.random.normal(k4, (C_in,), jnp.float32)
    g2 = 1.0 + 0.1 * jax.random.normal(k5, (C_out,), jnp.float32)
    b2 = 0.1 * jax.random.normal(k6, (C_out,), jnp.float32)
    return w_dw, g1, b1, w_pw, g2, b2


if __name__ == "__main__":
    key = jax.random.PRNGKey(0)
    kx, kp = jax.random.split(key)

    N, C_in, C_out, H, W = 2, 4, 8, 16, 16        # stride=1 (module default)
    x = jax.random.normal(kx, (N, C_in, H, W), jnp.float32)
    params = init_params(kp, C_in, C_out)

    fwd = jax.jit(block_forward)
    out = fwd(x, params)
    jax.block_until_ready(out)

    assert out.shape == (N, C_out, H, W), out.shape
    assert bool(jnp.all(out >= 0.0))              # final ReLU
    assert bool(jnp.all(jnp.isfinite(out)))

    # Compare against the pure-JAX f32 reference (kernel uses bf16 only for the
    # MXU matmul inputs -> small tolerance).
    ref = _block_reference(x, params)
    max_err = float(jnp.max(jnp.abs(out - ref)))
    assert max_err < 5e-2, f"max abs error vs reference: {max_err}"

    print("KERNEL_OK")
</pallas_src>

<mosaic_0001>
module attributes {stable_mosaic.version = 11 : i64} {
  func.func @_pw_conv_kernel(%arg0: i32, %arg1: memref<1x16x64xf32, #tpu.memory_space<vmem>>, %arg2: memref<1x64xf32, #tpu.memory_space<vmem>>, %arg3: memref<1x64xf32, #tpu.memory_space<vmem>>, %arg4: memref<64x128xbf16, #tpu.memory_space<vmem>>, %arg5: memref<1x16x128xf32, #tpu.memory_space<vmem>>, %arg6: memref<1x2x128xf32, #tpu.memory_space<vmem>>) attributes {dimension_semantics = [#tpu.dimension_semantics<parallel>], iteration_bounds = array<i64: 2>, scalar_prefetch = 0 : i64, scratch_operands = 0 : i64, tpu.core_type = #tpu.core_type<tc>, window_params = [{transform_indices = @transform_0, window_bounds = array<i64: 1, 16, 64>}, {pipeline_mode = #tpu.pipeline_mode<synchronous>, transform_indices = @transform_1, window_bounds = array<i64: 1, 64>}, {pipeline_mode = #tpu.pipeline_mode<synchronous>, transform_indices = @transform_2, window_bounds = array<i64: 1, 64>}, {pipeline_mode = #tpu.pipeline_mode<synchronous>, transform_indices = @transform_3, window_bounds = array<i64: 64, 128>}, {transform_indices = @transform_4, window_bounds = array<i64: 1, 16, 128>}, {transform_indices = @transform_5, window_bounds = array<i64: 1, 2, 128>}]} {
    %c0 = arith.constant 0 : index
    %c0_0 = arith.constant 0 : index
    %c0_1 = arith.constant 0 : index
    %0 = vector.load %arg1[%c0, %c0_0, %c0_1] : memref<1x16x64xf32, #tpu.memory_space<vmem>>, vector<1x16x64xf32>
    %1 = vector.shape_cast %0 : vector<1x16x64xf32> to vector<16x64xf32>
    %c0_2 = arith.constant 0 : index
    %c0_3 = arith.constant 0 : index
    %2 = vector.load %arg2[%c0_2, %c0_3] : memref<1x64xf32, #tpu.memory_space<vmem>>, vector<1x64xf32>
    %3 = vector.broadcast %2 : vector<1x64xf32> to vector<16x64xf32>
    %4 = arith.mulf %1, %3 : vector<16x64xf32>
    %c0_4 = arith.constant 0 : index
    %c0_5 = arith.constant 0 : index
    %5 = vector.load %arg3[%c0_4, %c0_5] : memref<1x64xf32, #tpu.memory_space<vmem>>, vector<1x64xf32>
    %6 = vector.broadcast %5 : vector<1x64xf32> to vector<16x64xf32>
    %7 = arith.addf %4, %6 : vector<16x64xf32>
    %cst = arith.constant 0.000000e+00 : f32
    %8 = vector.broadcast %cst : f32 to vector<16x64xf32>
    %9 = arith.maximumf %7, %8 : vector<16x64xf32>
    %10 = arith.truncf %9 : vector<16x64xf32> to vector<16x64xbf16>
    %c0_6 = arith.constant 0 : index
    %c0_7 = arith.constant 0 : index
    %11 = vector.load %arg4[%c0_6, %c0_7] : memref<64x128xbf16, #tpu.memory_space<vmem>>, vector<64x128xbf16>
    %cst_8 = arith.constant dense<0.000000e+00> : vector<16x128xf32>
    %12 = tpu.matmul %10, %11, %cst_8 {dimension_numbers = #tpu.dot_dimension_numbers<[1], [0], [0], [1], [0, 0, 1, 1], [], []>} : vector<16x64xbf16>, vector<64x128xbf16>, vector<16x128xf32> -> vector<16x128xf32>
    %c0_9 = arith.constant 0 : index
    %c0_10 = arith.constant 0 : index
    %c0_11 = arith.constant 0 : index
    %13 = vector.load %arg5[%c0_9, %c0_10, %c0_11] : memref<1x16x128xf32, #tpu.memory_space<vmem>>, vector<1x16x128xf32>
    %14 = vector.shape_cast %13 : vector<1x16x128xf32> to vector<16x128xf32>
    %15 = vector.shape_cast %12 : vector<16x128xf32> to vector<1x16x128xf32>
    tpu.vector_store %arg5[%c0_9, %c0_10, %c0_11], %15 {strides = array<i32>} : memref<1x16x128xf32, #tpu.memory_space<vmem>>, vector<1x16x128xf32>,
    %cst_12 = arith.constant dense<0.000000e+00> : vector<128xf32>
    %16 = vector.multi_reduction <add>, %12, %cst_12 [0] : vector<16x128xf32> to vector<128xf32>
    %17 = vector.shape_cast %16 : vector<128xf32> to vector<1x128xf32>
    %c0_13 = arith.constant 0 : index
    %c0_14 = arith.constant 0 : index
    %c0_15 = arith.constant 0 : index
    %18 = vector.load %arg6[%c0_13, %c0_14, %c0_15] : memref<1x2x128xf32, #tpu.memory_space<vmem>>, vector<1x1x128xf32>
    %19 = vector.shape_cast %18 : vector<1x1x128xf32> to vector<1x128xf32>
    %20 = vector.shape_cast %17 : vector<1x128xf32> to vector<1x1x128xf32>
    tpu.vector_store %arg6[%c0_13, %c0_14, %c0_15], %20 {strides = array<i32>} : memref<1x2x128xf32, #tpu.memory_space<vmem>>, vector<1x1x128xf32>,
    %21 = arith.mulf %12, %12 : vector<16x128xf32>
    %cst_16 = arith.constant dense<0.000000e+00> : vector<128xf32>
    %22 = vector.multi_reduction <add>, %21, %cst_16 [0] : vector<16x128xf32> to vector<128xf32>
    %23 = vector.shape_cast %22 : vector<128xf32> to vector<1x128xf32>
    %c0_17 = arith.constant 0 : index
    %c1 = arith.constant 1 : index
    %c0_18 = arith.constant 0 : index
    %24 = vector.load %arg6[%c0_17, %c1, %c0_18] : memref<1x2x128xf32, #tpu.memory_space<vmem>>, vector<1x1x128xf32>
    %25 = vector.shape_cast %24 : vector<1x1x128xf32> to vector<1x128xf32>
    %26 = vector.shape_cast %23 : vector<1x128xf32> to vector<1x1x128xf32>
    tpu.vector_store %arg6[%c0_17, %c1, %c0_18], %26 {strides = array<i32>} : memref<1x2x128xf32, #tpu.memory_space<vmem>>, vector<1x1x128xf32>,
    return
  }
  func.func @transform_0(%arg0: i32) -> (i32, i32, i32) {
    %c0_i32 = arith.constant 0 : i32
    %c0_i32_0 = arith.constant 0 : i32
    %c0_i32_1 = arith.constant 0 : i32
    return %arg0, %c0_i32, %c0_i32_0 : i32, i32, i32
  }
  func.func @transform_1(%arg0: i32) -> (i32, i32) {
    %c0_i32 = arith.constant 0 : i32
    %c0_i32_0 = arith.constant 0 : i32
    %c0_i32_1 = arith.constant 0 : i32
    return %c0_i32, %c0_i32_0 : i32, i32
  }
  func.func @transform_2(%arg0: i32) -> (i32, i32) {
    %c0_i32 = arith.constant 0 : i32
    %c0_i32_0 = arith.constant 0 : i32
    %c0_i32_1 = arith.constant 0 : i32
    return %c0_i32, %c0_i32_0 : i32, i32
  }
  func.func @transform_3(%arg0: i32) -> (i32, i32) {
    %c0_i32 = arith.constant 0 : i32
    %c0_i32_0 = arith.constant 0 : i32
    %c0_i32_1 = arith.constant 0 : i32
    return %c0_i32, %c0_i32_0 : i32, i32
  }
  func.func @transform_4(%arg0: i32) -> (i32, i32, i32) {
    %c0_i32 = arith.constant 0 : i32
    %c0_i32_0 = arith.constant 0 : i32
    %c0_i32_1 = arith.constant 0 : i32
    return %arg0, %c0_i32, %c0_i32_0 : i32, i32, i32
  }
  func.func @transform_5(%arg0: i32) -> (i32, i32, i32) {
    %c0_i32 = arith.constant 0 : i32
    %c0_i32_0 = arith.constant 0 : i32
    %c0_i32_1 = arith.constant 0 : i32
    return %arg0, %c0_i32, %c0_i32_0 : i32, i32, i32
  }
}

module attributes {stable_mosaic.version = 11 : i64} {
  func.func @_dw_conv_kernel(%arg0: i32, %arg1: memref<1x16x64xf32, #tpu.memory_space<vmem>>, %arg2: memref<9x64xf32, #tpu.memory_space<vmem>>, %arg3: memref<1x16x64xf32, #tpu.memory_space<vmem>>, %arg4: memref<1x2x64xf32, #tpu.memory_space<vmem>>, %arg5: memref<18x72xf32, #tpu.memory_space<vmem>>) attributes {dimension_semantics = [#tpu.dimension_semantics<parallel>], iteration_bounds = array<i64: 2>, scalar_prefetch = 0 : i64, scratch_operands = 1 : i64, tpu.core_type = #tpu.core_type<tc>, window_params = [{transform_indices = @transform_0, window_bounds = array<i64: 1, 16, 64>}, {pipeline_mode = #tpu.pipeline_mode<synchronous>, transform_indices = @transform_1, window_bounds = array<i64: 9, 64>}, {transform_indices = @transform_2, window_bounds = array<i64: 1, 16, 64>}, {transform_indices = @transform_3, window_bounds = array<i64: 1, 2, 64>}]} {
    %cst = arith.constant 0.000000e+00 : f32
    %0 = vector.broadcast %cst : f32 to vector<18x72xf32>
    %c0 = arith.constant 0 : index
    %c0_0 = arith.constant 0 : index
    %1 = vector.load %arg5[%c0, %c0_0] : memref<18x72xf32, #tpu.memory_space<vmem>>, vector<18x72xf32>
    tpu.vector_store %arg5[%c0, %c0_0], %0 {strides = array<i32>} : memref<18x72xf32, #tpu.memory_space<vmem>>, vector<18x72xf32>,
    %c0_1 = arith.constant 0 : index
    %c0_2 = arith.constant 0 : index
    %c0_3 = arith.constant 0 : index
    %2 = vector.load %arg1[%c0_1, %c0_2, %c0_3] : memref<1x16x64xf32, #tpu.memory_space<vmem>>, vector<1x16x64xf32>
    %3 = vector.shape_cast %2 : vector<1x16x64xf32> to vector<16x64xf32>
    %c1 = arith.constant 1 : index
    %c4 = arith.constant 4 : index
    %4 = vector.load %arg5[%c1, %c4] : memref<18x72xf32, #tpu.memory_space<vmem>>, vector<16x64xf32>
    tpu.vector_store %arg5[%c1, %c4], %3 {strides = array<i32>} : memref<18x72xf32, #tpu.memory_space<vmem>>, vector<16x64xf32>,
    %c0_4 = arith.constant 0 : index
    %c0_5 = arith.constant 0 : index
    %5 = vector.load %arg2[%c0_4, %c0_5] : memref<9x64xf32, #tpu.memory_space<vmem>>, vector<9x64xf32>
    %c0_6 = arith.constant 0 : index
    %c0_7 = arith.constant 0 : index
    %6 = vector.load %arg5[%c0_6, %c0_7] : memref<18x72xf32, #tpu.memory_space<vmem>>, vector<18x64xf32>
    %c0_8 = arith.constant 0 : index
    %c4_9 = arith.constant 4 : index
    %7 = vector.load %arg5[%c0_8, %c4_9] : memref<18x72xf32, #tpu.memory_space<vmem>>, vector<18x64xf32>
    %c0_10 = arith.constant 0 : index
    %c8 = arith.constant 8 : index
    %8 = vector.load %arg5[%c0_10, %c8] : memref<18x72xf32, #tpu.memory_space<vmem>>, vector<18x64xf32>
    %cst_11 = arith.constant 0.000000e+00 : f32
    %9 = vector.broadcast %cst_11 : f32 to vector<16x64xf32>
    %10 = vector.extract_strided_slice %5 {offsets = [0, 0], sizes = [1, 64], strides = [1, 1]} : vector<9x64xf32> to vector<1x64xf32>
    %11 = vector.extract_strided_slice %6 {offsets = [0, 0], sizes = [16, 64], strides = [1, 1]} : vector<18x64xf32> to vector<16x64xf32>
    %12 = vector.broadcast %10 : vector<1x64xf32> to vector<16x64xf32>
    %13 = arith.mulf %11, %12 : vector<16x64xf32>
    %14 = arith.addf %9, %13 : vector<16x64xf32>
    %15 = vector.extract_strided_slice %5 {offsets = [1, 0], sizes = [1, 64], strides = [1, 1]} : vector<9x64xf32> to vector<1x64xf32>
    %16 = vector.extract_strided_slice %7 {offsets = [0, 0], sizes = [16, 64], strides = [1, 1]} : vector<18x64xf32> to vector<16x64xf32>
    %17 = vector.broadcast %15 : vector<1x64xf32> to vector<16x64xf32>
    %18 = arith.mulf %16, %17 : vector<16x64xf32>
    %19 = arith.addf %14, %18 : vector<16x64xf32>
    %20 = vector.extract_strided_slice %5 {offsets = [2, 0], sizes = [1, 64], strides = [1, 1]} : vector<9x64xf32> to vector<1x64xf32>
    %21 = vector.extract_strided_slice %8 {offsets = [0, 0], sizes = [16, 64], strides = [1, 1]} : vector<18x64xf32> to vector<16x64xf32>
    %22 = vector.broadcast %20 : vector<1x64xf32> to vector<16x64xf32>
    %23 = arith.mulf %21, %22 : vector<16x64xf32>
    %24 = arith.addf %19, %23 : vector<16x64xf32>
    %25 = vector.extract_strided_slice %5 {offsets = [3, 0], sizes = [1, 64], strides = [1, 1]} : vector<9x64xf32> to vector<1x64xf32>
    %26 = vector.extract_strided_slice %6 {offsets = [1, 0], sizes = [16, 64], strides = [1, 1]} : vector<18x64xf32> to vector<16x64xf32>
    %27 = vector.broadcast %25 : vector<1x64xf32> to vector<16x64xf32>
    %28 = arith.mulf %26, %27 : vector<16x64xf32>
    %29 = arith.addf %24, %28 : vector<16x64xf32>
    %30 = vector.extract_strided_slice %5 {offsets = [4, 0], sizes = [1, 64], strides = [1, 1]} : vector<9x64xf32> to vector<1x64xf32>
    %31 = vector.extract_strided_slice %7 {offsets = [1, 0], sizes = [16, 64], strides = [1, 1]} : vector<18x64xf32> to vector<16x64xf32>
    %32 = vector.broadcast %30 : vector<1x64xf32> to vector<16x64xf32>
    %33 = arith.mulf %31, %32 : vector<16x64xf32>
    %34 = arith.addf %29, %33 : vector<16x64xf32>
    %35 = vector.extract_strided_slice %5 {offsets = [5, 0], sizes = [1, 64], strides = [1, 1]} : vector<9x64xf32> to vector<1x64xf32>
    %36 = vector.extract_strided_slice %8 {offsets = [1, 0], sizes = [16, 64], strides = [1, 1]} : vector<18x64xf32> to vector<16x64xf32>
    %37 = vector.broadcast %35 : vector<1x64xf32> to vector<16x64xf32>
    %38 = arith.mulf %36, %37 : vector<16x64xf32>
    %39 = arith.addf %34, %38 : vector<16x64xf32>
    %40 = vector.extract_strided_slice %5 {offsets = [6, 0], sizes = [1, 64], strides = [1, 1]} : vector<9x64xf32> to vector<1x64xf32>
    %41 = vector.extract_strided_slice %6 {offsets = [2, 0], sizes = [16, 64], strides = [1, 1]} : vector<18x64xf32> to vector<16x64xf32>
    %42 = vector.broadcast %40 : vector<1x64xf32> to vector<16x64xf32>
    %43 = arith.mulf %41, %42 : vector<16x64xf32>
    %44 = arith.addf %39, %43 : vector<16x64xf32>
    %45 = vector.extract_strided_slice %5 {offsets = [7, 0], sizes = [1, 64], strides = [1, 1]} : vector<9x64xf32> to vector<1x64xf32>
    %46 = vector.extract_strided_slice %7 {offsets = [2, 0], sizes = [16, 64], strides = [1, 1]} : vector<18x64xf32> to vector<16x64xf32>
    %47 = vector.broadcast %45 : vector<1x64xf32> to vector<16x64xf32>
    %48 = arith.mulf %46, %47 : vector<16x64xf32>
    %49 = arith.addf %44, %48 : vector<16x64xf32>
    %50 = vector.extract_strided_slice %5 {offsets = [8, 0], sizes = [1, 64], strides = [1, 1]} : vector<9x64xf32> to vector<1x64xf32>
    %51 = vector.extract_strided_slice %8 {offsets = [2, 0], sizes = [16, 64], strides = [1, 1]} : vector<18x64xf32> to vector<16x64xf32>
    %52 = vector.broadcast %50 : vector<1x64xf32> to vector<16x64xf32>
    %53 = arith.mulf %51, %52 : vector<16x64xf32>
    %54 = arith.addf %49, %53 : vector<16x64xf32>
    %c0_12 = arith.constant 0 : index
    %c0_13 = arith.constant 0 : index
    %c0_14 = arith.constant 0 : index
    %55 = vector.load %arg3[%c0_12, %c0_13, %c0_14] : memref<1x16x64xf32, #tpu.memory_space<vmem>>, vector<1x16x64xf32>
    %56 = vector.shape_cast %55 : vector<1x16x64xf32> to vector<16x64xf32>
    %57 = vector.shape_cast %54 : vector<16x64xf32> to vector<1x16x64xf32>
    tpu.vector_store %arg3[%c0_12, %c0_13, %c0_14], %57 {strides = array<i32>} : memref<1x16x64xf32, #tpu.memory_space<vmem>>, vector<1x16x64xf32>,
    %cst_15 = arith.constant dense<0.000000e+00> : vector<64xf32>
    %58 = vector.multi_reduction <add>, %54, %cst_15 [0] : vector<16x64xf32> to vector<64xf32>
    %59 = vector.shape_cast %58 : vector<64xf32> to vector<1x64xf32>
    %c0_16 = arith.constant 0 : index
    %c0_17 = arith.constant 0 : index
    %c0_18 = arith.constant 0 : index
    %60 = vector.load %arg4[%c0_16, %c0_17, %c0_18] : memref<1x2x64xf32, #tpu.memory_space<vmem>>, vector<1x1x64xf32>
    %61 = vector.shape_cast %60 : vector<1x1x64xf32> to vector<1x64xf32>
    %62 = vector.shape_cast %59 : vector<1x64xf32> to vector<1x1x64xf32>
    tpu.vector_store %arg4[%c0_16, %c0_17, %c0_18], %62 {strides = array<i32>} : memref<1x2x64xf32, #tpu.memory_space<vmem>>, vector<1x1x64xf32>,
    %63 = arith.mulf %54, %54 : vector<16x64xf32>
    %cst_19 = arith.constant dense<0.000000e+00> : vector<64xf32>
    %64 = vector.multi_reduction <add>, %63, %cst_19 [0] : vector<16x64xf32> to vector<64xf32>
    %65 = vector.shape_cast %64 : vector<64xf32> to vector<1x64xf32>
    %c0_20 = arith.constant 0 : index
    %c1_21 = arith.constant 1 : index
    %c0_22 = arith.constant 0 : index
    %66 = vector.load %arg4[%c0_20, %c1_21, %c0_22] : memref<1x2x64xf32, #tpu.memory_space<vmem>>, vector<1x1x64xf32>
    %67 = vector.shape_cast %66 : vector<1x1x64xf32> to vector<1x64xf32>
    %68 = vector.shape_cast %65 : vector<1x64xf32> to vector<1x1x64xf32>
    tpu.vector_store %arg4[%c0_20, %c1_21, %c0_22], %68 {strides = array<i32>} : memref<1x2x64xf32, #tpu.memory_space<vmem>>, vector<1x1x64xf32>,
    return
  }
  func.func @transform_0(%arg0: i32) -> (i32, i32, i32) {
    %c0_i32 = arith.constant 0 : i32
    %c0_i32_0 = arith.constant 0 : i32
    %c0_i32_1 = arith.constant 0 : i32
    return %arg0, %c0_i32, %c0_i32_0 : i32, i32, i32
  }
  func.func @transform_1(%arg0: i32) -> (i32, i32) {
    %c0_i32 = arith.constant 0 : i32
    %c0_i32_0 = arith.constant 0 : i32
    %c0_i32_1 = arith.constant 0 : i32
    return %c0_i32, %c0_i32_0 : i32, i32
  }
  func.func @transform_2(%arg0: i32) -> (i32, i32, i32) {
    %c0_i32 = arith.constant 0 : i32
    %c0_i32_0 = arith.constant 0 : i32
    %c0_i32_1 = arith.constant 0 : i32
    return %arg0, %c0_i32, %c0_i32_0 : i32, i32, i32
  }
  func.func @transform_3(%arg0: i32) -> (i32, i32, i32) {
    %c0_i32 = arith.constant 0 : i32
    %c0_i32_0 = arith.constant 0 : i32
    %c0_i32_1 = arith.constant 0 : i32
    return %arg0, %c0_i32, %c0_i32_0 : i32, i32, i32
  }
}

module attributes {stable_mosaic.version = 11 : i64} {
  func.func @_bn2_relu_kernel(%arg0: i32, %arg1: memref<1x16x128xf32, #tpu.memory_space<vmem>>, %arg2: memref<1x128xf32, #tpu.memory_space<vmem>>, %arg3: memref<1x128xf32, #tpu.memory_space<vmem>>, %arg4: memref<1x16x128xf32, #tpu.memory_space<vmem>>) attributes {dimension_semantics = [#tpu.dimension_semantics<parallel>], iteration_bounds = array<i64: 2>, scalar_prefetch = 0 : i64, scratch_operands = 0 : i64, tpu.core_type = #tpu.core_type<tc>, window_params = [{transform_indices = @transform_0, window_bounds = array<i64: 1, 16, 128>}, {pipeline_mode = #tpu.pipeline_mode<synchronous>, transform_indices = @transform_1, window_bounds = array<i64: 1, 128>}, {pipeline_mode = #tpu.pipeline_mode<synchronous>, transform_indices = @transform_2, window_bounds = array<i64: 1, 128>}, {transform_indices = @transform_3, window_bounds = array<i64: 1, 16, 128>}]} {
    %c0 = arith.constant 0 : index
    %c0_0 = arith.constant 0 : index
    %c0_1 = arith.constant 0 : index
    %0 = vector.load %arg1[%c0, %c0_0, %c0_1] : memref<1x16x128xf32, #tpu.memory_space<vmem>>, vector<1x16x128xf32>
    %1 = vector.shape_cast %0 : vector<1x16x128xf32> to vector<16x128xf32>
    %c0_2 = arith.constant 0 : index
    %c0_3 = arith.constant 0 : index
    %2 = vector.load %arg2[%c0_2, %c0_3] : memref<1x128xf32, #tpu.memory_space<vmem>>, vector<1x128xf32>
    %3 = vector.broadcast %2 : vector<1x128xf32> to vector<16x128xf32>
    %4 = arith.mulf %1, %3 : vector<16x128xf32>
    %c0_4 = arith.constant 0 : index
    %c0_5 = arith.constant 0 : index
    %5 = vector.load %arg3[%c0_4, %c0_5] : memref<1x128xf32, #tpu.memory_space<vmem>>, vector<1x128xf32>
    %6 = vector.broadcast %5 : vector<1x128xf32> to vector<16x128xf32>
    %7 = arith.addf %4, %6 : vector<16x128xf32>
    %cst = arith.constant 0.000000e+00 : f32
    %8 = vector.broadcast %cst : f32 to vector<16x128xf32>
    %9 = arith.maximumf %7, %8 : vector<16x128xf32>
    %c0_6 = arith.constant 0 : index
    %c0_7 = arith.constant 0 : index
    %c0_8 = arith.constant 0 : index
    %10 = vector.load %arg4[%c0_6, %c0_7, %c0_8] : memref<1x16x128xf32, #tpu.memory_space<vmem>>, vector<1x16x128xf32>
    %11 = vector.shape_cast %10 : vector<1x16x128xf32> to vector<16x128xf32>
    %12 = vector.shape_cast %9 : vector<16x128xf32> to vector<1x16x128xf32>
    tpu.vector_store %arg4[%c0_6, %c0_7, %c0_8], %12 {strides = array<i32>} : memref<1x16x128xf32, #tpu.memory_space<vmem>>, vector<1x16x128xf32>,
    return
  }
  func.func @transform_0(%arg0: i32) -> (i32, i32, i32) {
    %c0_i32 = arith.constant 0 : i32
    %c0_i32_0 = arith.constant 0 : i32
    %c0_i32_1 = arith.constant 0 : i32
    return %arg0, %c0_i32, %c0_i32_0 : i32, i32, i32
  }
  func.func @transform_1(%arg0: i32) -> (i32, i32) {
    %c0_i32 = arith.constant 0 : i32
    %c0_i32_0 = arith.constant 0 : i32
    %c0_i32_1 = arith.constant 0 : i32
    return %c0_i32, %c0_i32_0 : i32, i32
  }
  func.func @transform_2(%arg0: i32) -> (i32, i32) {
    %c0_i32 = arith.constant 0 : i32
    %c0_i32_0 = arith.constant 0 : i32
    %c0_i32_1 = arith.constant 0 : i32
    return %c0_i32, %c0_i32_0 : i32, i32
  }
  func.func @transform_3(%arg0: i32) -> (i32, i32, i32) {
    %c0_i32 = arith.constant 0 : i32
    %c0_i32_0 = arith.constant 0 : i32
    %c0_i32_1 = arith.constant 0 : i32
    return %arg0, %c0_i32, %c0_i32_0 : i32, i32, i32
  }
}

</mosaic_0001>

<bundles_post_ra>
// kernel: tile.36
= control target key start
LH: loop header
LB: loop body
LE: loop exit
PB: predicated region body
PF: predicated region fallthrough
CT: control target
= control target key end

     0   :  { %s28_s0 = inlined_call_operand.vmem [shape: f32[4], index: 0, kind: input, shape index: {}]   ;;  %s29_s1 = inlined_call_operand.vmem [shape: f32[16,4], index: 1, kind: output, shape index: {}]  }
   0x1   :  { %v4_v0 = vld [vmem:[%s28_s0] ss:$0 sm:$0xff] }
   0x2   :  { %5 = vst [vmem:[%s29_s1] sm:$0xff] %v4_v0 }
   0x3   :  { %8 = vst [vmem:[%s29_s1 + $0x8] sm:$0xff] %v4_v0 }

// kernel: tile.37
= control target key start
LH: loop header
LB: loop body
LE: loop exit
PB: predicated region body
PF: predicated region fallthrough
CT: control target
= control target key end

     0   :  { %s131_s10 = smov 60   ;;  %s132_s11 = smov 52   ;;  %vm3_vm0 = vcmask 31744   ;;  %vm9_vm1 = vcmask 523744   ;;  %vm15_vm2 = vcmask 490944   ;;  %vm21_vm3 = vcmask 458144   ;;  %s207_s0 = inlined_call_operand.vmem [shape: f32[16,4], index: 0, kind: input, shape index: {}]   ;;  %s208_s1 = inlined_call_operand.vmem [shape: f32[1,64], index: 1, kind: output, shape index: {}]  }
   0x1   :  { %v101_v0 = vld [vmem:[%s207_s0 + $0xf] sm:$0x1]   ;;  %v103_v1 = vld [vmem:[%s207_s0 + $0xd] sm:$0x1]   ;;  %v105_v2 = vld [vmem:[%s207_s0 + $0xb] sm:$0x1]  }
   0x2   :  { %7 = vrot.lane.b32.xlu0 %v101_v0, %s131_s10  ;;  %19 = vrot.lane.b32.xlu1 %v103_v1, %s132_s11  ;;  %s133_s14 = smov 44   ;;  %v102_v3 = vld [vmem:[%s207_s0 + $0xe] sm:$0x1]   ;;  %v104_v4 = vld [vmem:[%s207_s0 + $0xc] sm:$0x1]   ;;  %s134_s19 = smov 56  }
   0x3   :  { %31 = vrot.lane.b32.xlu2 %v105_v2, %s133_s14  ;;  %s135_s20 = smov 48   ;;  %v106_v5 = vld [vmem:[%s207_s0 + $0xa] sm:$0x1]   ;;  %s136_s23 = smov 40   ;;  %v107_v6 = vld [vmem:[%s207_s0 + $0x9] sm:$0x1]  }
   0x4   :  { %v108_v7 = vld [vmem:[%s207_s0 + $0x8] sm:$0x1]   ;;  %s137_s28 = smov 36   ;;  %s138_s29 = smov 32   ;;  %v109_v8 = vld [vmem:[%s207_s0 + $0x7] sm:$0x1]  }
   0x5   :  { %s139_s3 = smov 28   ;;  %v110_v9 = vld [vmem:[%s207_s0 + $0x6] sm:$0x1]   ;;  %v111_v10 = vld [vmem:[%s207_s0 + $0x5] sm:$0x1]   ;;  %s140_s8 = smov 24  }
   0x6   :  { %s141_s9 = smov 20   ;;  %v112_v11 = vld [vmem:[%s207_s0 + $0x4] sm:$0x1]   ;;  %s142_s12 = smov 16   ;;  %v113_v12 = vld [vmem:[%s207_s0 + $0x3] sm:$0x1]  }
   0x7   :  { %v114_v13 = vld [vmem:[%s207_s0 + $0x2] sm:$0x1]   ;;  %s143_s17 = smov 12   ;;  %s144_s18 = smov 8   ;;  %v115_v14 = vld [vmem:[%s207_s0 + $0x1] sm:$0x1]  }
   0x8   :  { %s145_s21 = smov 4   ;;  %v2_v15 = vld [vmem:[%s207_s0] sm:$0x1]   ;;  %vm27_vm4 = vcmask 425344   ;;  %vm33_vm5 = vcmask 392544   ;;  %vm39_vm6 = vcmask 359744  }
   0x9   :  { %4 = vst.msk [vmem:[#allocation0] sm:$0x1] %vm3_vm0, %v2_v15   ;;  %vm45_vm7 = vcmask 326944   ;;  %vm51_vm8 = vcmask 294144   ;;  %vm57_vm9 = vcmask 261344   ;;  %vm63_vm10 = vcmask 228544  }
   0xa   :  { %13 = vrot.lane.b32.xlu0 %v102_v3, %s134_s19  ;;  %25 = vrot.lane.b32.xlu1 %v104_v4, %s135_s20  ;;  %vm69_vm11 = vcmask 195744   ;;  %vm75_vm12 = vcmask 162944   ;;  %vm81_vm13 = vcmask 130144   ;;  %vm87_vm14 = vcmask 97344  }
   0xb   :  { %37 = vrot.lane.b32.xlu2 %v106_v5, %s136_s23  ;;  %vm93_vm15 = vcmask 64544  }
  0x12   :  { %43 = vrot.lane.b32.xlu0 %v107_v6, %s137_s28  ;;  %49 = vrot.lane.b32.xlu1 %v108_v7, %s138_s29 }
  0x13   :  { %55 = vrot.lane.b32.xlu2 %v109_v8, %s139_s3 }
  0x1a   :  { %61 = vrot.lane.b32.xlu0 %v110_v9, %s140_s8  ;;  %67 = vrot.lane.b32.xlu1 %v111_v10, %s141_s9 }
  0x1b   :  { %73 = vrot.lane.b32.xlu2 %v112_v11, %s142_s12 }
  0x22   :  { %79 = vrot.lane.b32.xlu0 %v113_v12, %s143_s17  ;;  %85 = vrot.lane.b32.xlu1 %v114_v13, %s144_s18 }
  0x23   :  { %91 = vrot.lane.b32.xlu2 %v115_v14, %s145_s21 }
  0x5d   :  { %v32_v16 = vpop.permute.xlu2 %31  }
  0x65   :  { %v38_v17 = vpop.permute.xlu2 %37  }
  0x6d   :  { %v56_v18 = vpop.permute.xlu2 %55  }
  0x74   :  { %v8_v19 = vpop.permute.xlu0 %7   ;;  %v20_v20 = vpop.permute.xlu1 %19  }
  0x75   :  { %10 = vst.msk [vmem:[#allocation0] sm:$0x1] %vm9_vm1, %v8_v19   ;;  %v74_v21 = vpop.permute.xlu2 %73  }
  0x7c   :  { %v14_v22 = vpop.permute.xlu0 %13   ;;  %v26_v23 = vpop.permute.xlu1 %25  }
  0x7d   :  { %16 = vst.msk [vmem:[#allocation0] sm:$0x1] %vm15_vm2, %v14_v22   ;;  %v92_v24 = vpop.permute.xlu2 %91  }
  0x7e   :  { %22 = vst.msk [vmem:[#allocation0] sm:$0x1] %vm21_vm3, %v20_v20  }
  0x7f   :  { %28 = vst.msk [vmem:[#allocation0] sm:$0x1] %vm27_vm4, %v26_v23  }
  0x80   :  { %34 = vst.msk [vmem:[#allocation0] sm:$0x1] %vm33_vm5, %v32_v16  }
  0x81   :  { %40 = vst.msk [vmem:[#allocation0] sm:$0x1] %vm39_vm6, %v38_v17  }
  0x84   :  { %v44_v25 = vpop.permute.xlu0 %43   ;;  %v50_v26 = vpop.permute.xlu1 %49  }
  0x85   :  { %46 = vst.msk [vmem:[#allocation0] sm:$0x1] %vm45_vm7, %v44_v25  }
  0x86   :  { %52 = vst.msk [vmem:[#allocation0] sm:$0x1] %vm51_vm8, %v50_v26  }
  0x87   :  { %58 = vst.msk [vmem:[#allocation0] sm:$0x1] %vm57_vm9, %v56_v18  }
  0x8c   :  { %v62_v27 = vpop.permute.xlu0 %61   ;;  %v68_v28 = vpop.permute.xlu1 %67  }
  0x8d   :  { %64 = vst.msk [vmem:[#allocation0] sm:$0x1] %vm63_vm10, %v62_v27  }
  0x8e   :  { %70 = vst.msk [vmem:[#allocation0] sm:$0x1] %vm69_vm11, %v68_v28  }
  0x8f   :  { %76 = vst.msk [vmem:[#allocation0] sm:$0x1] %vm75_vm12, %v74_v21  }
  0x94   :  { %v80_v29 = vpop.permute.xlu0 %79   ;;  %v86_v30 = vpop.permute.xlu1 %85  }
  0x95   :  { %82 = vst.msk [vmem:[#allocation0] sm:$0x1] %vm81_vm13, %v80_v29  }
  0x96   :  { %88 = vst.msk [vmem:[#allocation0] sm:$0x1] %vm87_vm14, %v86_v30  }
  0x97   :  { %94 = vst.msk [vmem:[#allocation0] sm:$0x1] %vm93_vm15, %v92_v24  }
  0x9e   :  { %v97_v31 = vld [vmem:[#allocation0] sm:$0x1] }
  0x9f   :  { %100 = vst [vmem:[%s208_s1] sm:$0x1] %v97_v31 }

// kernel: tile.46
= control target key start
LH: loop header
LB: loop body
LE: loop exit
PB: predicated region body
PF: predicated region fallthrough
CT: control target
= control target key end

     0   :  { %s28_s0 = inlined_call_operand.vmem [shape: f32[8], index: 0, kind: input, shape index: {}]   ;;  %s29_s1 = inlined_call_operand.vmem [shape: f32[16,8], index: 1, kind: output, shape index: {}]  }
   0x1   :  { %v4_v0 = vld [vmem:[%s28_s0] ss:$0 sm:$0xff] }
   0x2   :  { %5 = vst [vmem:[%s29_s1] sm:$0xff] %v4_v0 }
   0x3   :  { %8 = vst [vmem:[%s29_s1 + $0x8] sm:$0xff] %v4_v0 }

// kernel: tile.47
= control target key start
LH: loop header
LB: loop body
LE: loop exit
PB: predicated region body
PF: predicated region fallthrough
CT: control target
= control target key end

     0   :  { %s131_s10 = smov 120   ;;  %s132_s11 = smov 104   ;;  %vm3_vm0 = vcmask 64512   ;;  %vm9_vm1 = vcmask 1048512   ;;  %vm15_vm2 = vcmask 982912   ;;  %vm21_vm3 = vcmask 917312   ;;  %s207_s0 = inlined_call_operand.vmem [shape: f32[16,8], index: 0, kind: input, shape index: {}]   ;;  %s208_s1 = inlined_call_operand.vmem [shape: f32[1,128], index: 1, kind: output, shape index: {}]  }
   0x1   :  { %v101_v0 = vld [vmem:[%s207_s0 + $0xf] sm:$0x1]   ;;  %v103_v1 = vld [vmem:[%s207_s0 + $0xd] sm:$0x1]   ;;  %v105_v2 = vld [vmem:[%s207_s0 + $0xb] sm:$0x1]  }
   0x2   :  { %7 = vrot.lane.b32.xlu0 %v101_v0, %s131_s10  ;;  %19 = vrot.lane.b32.xlu1 %v103_v1, %s132_s11  ;;  %s133_s14 = smov 88   ;;  %v102_v3 = vld [vmem:[%s207_s0 + $0xe] sm:$0x1]   ;;  %v104_v4 = vld [vmem:[%s207_s0 + $0xc] sm:$0x1]   ;;  %s134_s19 = smov 112  }
   0x3   :  { %31 = vrot.lane.b32.xlu2 %v105_v2, %s133_s14  ;;  %s135_s20 = smov 96   ;;  %v106_v5 = vld [vmem:[%s207_s0 + $0xa] sm:$0x1]   ;;  %s136_s23 = smov 80   ;;  %v107_v6 = vld [vmem:[%s207_s0 + $0x9] sm:$0x1]  }
   0x4   :  { %v108_v7 = vld [vmem:[%s207_s0 + $0x8] sm:$0x1]   ;;  %s137_s28 = smov 72   ;;  %s138_s29 = smov 64   ;;  %v109_v8 = vld [vmem:[%s207_s0 + $0x7] sm:$0x1]  }
   0x5   :  { %s139_s3 = smov 56   ;;  %v110_v9 = vld [vmem:[%s207_s0 + $0x6] sm:$0x1]   ;;  %v111_v10 = vld [vmem:[%s207_s0 + $0x5] sm:$0x1]   ;;  %s140_s8 = smov 48  }
   0x6   :  { %s141_s9 = smov 40   ;;  %v112_v11 = vld [vmem:[%s207_s0 + $0x4] sm:$0x1]   ;;  %s142_s12 = smov 32   ;;  %v113_v12 = vld [vmem:[%s207_s0 + $0x3] sm:$0x1]  }
   0x7   :  { %v114_v13 = vld [vmem:[%s207_s0 + $0x2] sm:$0x1]   ;;  %s143_s17 = smov 24   ;;  %s144_s18 = smov 16   ;;  %v115_v14 = vld [vmem:[%s207_s0 + $0x1] sm:$0x1]  }
   0x8   :  { %s145_s21 = smov 8   ;;  %v2_v15 = vld [vmem:[%s207_s0] sm:$0x1]   ;;  %vm27_vm4 = vcmask 851712   ;;  %vm33_vm5 = vcmask 786112   ;;  %vm39_vm6 = vcmask 720512  }
   0x9   :  { %4 = vst.msk [vmem:[#allocation0] sm:$0x1] %vm3_vm0, %v2_v15   ;;  %vm45_vm7 = vcmask 654912   ;;  %vm51_vm8 = vcmask 589312   ;;  %vm57_vm9 = vcmask 523712   ;;  %vm63_vm10 = vcmask 458112  }
   0xa   :  { %13 = vrot.lane.b32.xlu0 %v102_v3, %s134_s19  ;;  %25 = vrot.lane.b32.xlu1 %v104_v4, %s135_s20  ;;  %vm69_vm11 = vcmask 392512   ;;  %vm75_vm12 = vcmask 326912   ;;  %vm81_vm13 = vcmask 261312   ;;  %vm87_vm14 = vcmask 195712  }
   0xb   :  { %37 = vrot.lane.b32.xlu2 %v106_v5, %s136_s23  ;;  %vm93_vm15 = vcmask 130112  }
  0x12   :  { %43 = vrot.lane.b32.xlu0 %v107_v6, %s137_s28  ;;  %49 = vrot.lane.b32.xlu1 %v108_v7, %s138_s29 }
  0x13   :  { %55 = vrot.lane.b32.xlu2 %v109_v8, %s139_s3 }
  0x1a   :  { %61 = vrot.lane.b32.xlu0 %v110_v9, %s140_s8  ;;  %67 = vrot.lane.b32.xlu1 %v111_v10, %s141_s9 }
  0x1b   :  { %73 = vrot.lane.b32.xlu2 %v112_v11, %s142_s12 }
  0x22   :  { %79 = vrot.lane.b32.xlu0 %v113_v12, %s143_s17  ;;  %85 = vrot.lane.b32.xlu1 %v114_v13, %s144_s18 }
  0x23   :  { %91 = vrot.lane.b32.xlu2 %v115_v14, %s145_s21 }
  0x5d   :  { %v32_v16 = vpop.permute.xlu2 %31  }
  0x65   :  { %v38_v17 = vpop.permute.xlu2 %37  }
  0x6d   :  { %v56_v18 = vpop.permute.xlu2 %55  }
  0x74   :  { %v8_v19 = vpop.permute.xlu0 %7   ;;  %v20_v20 = vpop.permute.xlu1 %19  }
  0x75   :  { %10 = vst.msk [vmem:[#allocation0] sm:$0x1] %vm9_vm1, %v8_v19   ;;  %v74_v21 = vpop.permute.xlu2 %73  }
  0x7c   :  { %v14_v22 = vpop.permute.xlu0 %13   ;;  %v26_v23 = vpop.permute.xlu1 %25  }
  0x7d   :  { %16 = vst.msk [vmem:[#allocation0] sm:$0x1] %vm15_vm2, %v14_v22   ;;  %v92_v24 = vpop.permute.xlu2 %91  }
  0x7e   :  { %22 = vst.msk [vmem:[#allocation0] sm:$0x1] %vm21_vm3, %v20_v20  }
  0x7f   :  { %28 = vst.msk [vmem:[#allocation0] sm:$0x1] %vm27_vm4, %v26_v23  }
  0x80   :  { %34 = vst.msk [vmem:[#allocation0] sm:$0x1] %vm33_vm5, %v32_v16  }
  0x81   :  { %40 = vst.msk [vmem:[#allocation0] sm:$0x1] %vm39_vm6, %v38_v17  }
  0x84   :  { %v44_v25 = vpop.permute.xlu0 %43   ;;  %v50_v26 = vpop.permute.xlu1 %49  }
  0x85   :  { %46 = vst.msk [vmem:[#allocation0] sm:$0x1] %vm45_vm7, %v44_v25  }
  0x86   :  { %52 = vst.msk [vmem:[#allocation0] sm:$0x1] %vm51_vm8, %v50_v26  }
  0x87   :  { %58 = vst.msk [vmem:[#allocation0] sm:$0x1] %vm57_vm9, %v56_v18  }
  0x8c   :  { %v62_v27 = vpop.permute.xlu0 %61   ;;  %v68_v28 = vpop.permute.xlu1 %67  }
  0x8d   :  { %64 = vst.msk [vmem:[#allocation0] sm:$0x1] %vm63_vm10, %v62_v27  }
  0x8e   :  { %70 = vst.msk [vmem:[#allocation0] sm:$0x1] %vm69_vm11, %v68_v28  }
  0x8f   :  { %76 = vst.msk [vmem:[#allocation0] sm:$0x1] %vm75_vm12, %v74_v21  }
  0x94   :  { %v80_v29 = vpop.permute.xlu0 %79   ;;  %v86_v30 = vpop.permute.xlu1 %85  }
  0x95   :  { %82 = vst.msk [vmem:[#allocation0] sm:$0x1] %vm81_vm13, %v80_v29  }
  0x96   :  { %88 = vst.msk [vmem:[#allocation0] sm:$0x1] %vm87_vm14, %v86_v30  }
  0x97   :  { %94 = vst.msk [vmem:[#allocation0] sm:$0x1] %vm93_vm15, %v92_v24  }
  0x9e   :  { %v97_v31 = vld [vmem:[#allocation0] sm:$0x1] }
  0x9f   :  { %100 = vst [vmem:[%s208_s1] sm:$0x1] %v97_v31 }

// kernel: block_forward.4
= control target key start
LH: loop header
LB: loop body
LE: loop exit
PB: predicated region body
PF: predicated region fallthrough
CT: control target
= control target key end

     0   :  { %s493_s18 = smov 0   ;;  %s535_s0 = inlined_call_operand.vmem [shape: f32[2,16,64], index: 0, kind: input, shape index: {}]   ;;  %s536_s1 = inlined_call_operand.vmem [shape: f32[1,64], index: 1, kind: input, shape index: {}]   ;;  %s537_s2 = inlined_call_operand.vmem [shape: f32[1,64], index: 2, kind: input, shape index: {}]   ;;  %s538_s3 = inlined_call_operand.vmem [shape: bf16[64,128], index: 3, kind: input, shape index: {}]   ;;  %s539_s4 = inlined_call_operand.vmem [shape: f32[2,16,128], index: 4, kind: output, shape index: {0}]   ;;  %s540_s5 = inlined_call_operand.vmem [shape: f32[2,2,128], index: 5, kind: output, shape index: {1}]  }
   0x1 LB: > { %s410_s19 = sadd.s32 4294967295, %s461_s18   ;;  %p414_p0 = scmp.ge.s32.totalorder %s461_s18, 1  ;;  %s461_s18 = sphi %s493_s18, %s16_s18  }
   0x2   : > { %p190_p1 = scmp.lt.s32.totalorder %s461_s18, 3 }
   0x4   : > { %p191_p2 = pnand %p414_p0, %p190_p1 }
   0x5   : > { %p222_p3 = scmp.lt.s32.totalorder (!%p191_p2), %s410_s19, 1 }
   0x6   : > { %194 = sbr.rel (%p191_p2) target bundleno = 178 (0xb2), region = 36 }
   0xb   : > { %v444_v0 = vld [vmem:[%s538_s3 + $0x18] sm:$0xff]  ;;  %v443_v1 = vld [vmem:[%s538_s3 + $0x10] sm:$0xff]  ;;  %s542_s19 = smov (!%p222_p3, %s410_s19), 1  ;;  %v453_v2 = vld [vmem:[%s536_s1] ss:$0 sm:$0xff]  ;;  %vm286_vm0 = vcmask 523264  }
   0xc   : > { %294 = vmatpush.bf16.msra.mxu0 %v444_v0  ;;  %s439_s26 = sshll.u32 %s542_s19, 4  ;;  %v454_v3 = vld [vmem:[%s537_s2] ss:$0 sm:$0xff]  ;;  %v442_v4 = vld [vmem:[%s538_s3 + $0x8] sm:$0xff]  ;;  %s419_s14 = sshll.u32 %s542_s19, 1 }
   0xd   : > { %s226_s29 = scalar_lea.vmem %s535_s0, %s439_s26  ;;  %v441_v11 = vld [vmem:[%s538_s3] sm:$0xff]  ;;  %s231_s13 = scalar_lea.vmem %s539_s4, %s439_s26 }
   0xe   : > { %v237_v5 = vld [vmem:[%s226_s29] sm:$0xff]  ;;  %v238_v6 = vld [vmem:[%s226_s29 + $0x8] sm:$0xff]  ;;  %s235_s17 = scalar_lea.vmem %s540_s5, %s419_s14 }
   0xf   : > { %v243_v7 = vmul.f32 %v453_v2, %v237_v5  ;;  %v244_v8 = vmul.f32 %v453_v2, %v238_v6 }
  0x10   : > { %295 = vmatpush.bf16.msra.mxu0 %v443_v1 }
  0x11   : > { %v249_v9 = vadd.f32 %v454_v3, %v243_v7  ;;  %v250_v10 = vadd.f32 %v454_v3, %v244_v8 }
  0x13   : > { %v251_v12 = vmax.f32 %v249_v9, 0.0  ;;  %v252_v13 = vmax.f32 %v250_v10, 0.0 }
  0x14   : > { %296 = vmatpush.bf16.msra.mxu0 %v442_v4 }
  0x15   : > { %v253_v14 = vpack.c.bf16 %v252_v13, %v251_v12 }
  0x18   : > { %297 = vmatpush.bf16.msra.mxu0 %v441_v11 }
  0x1b   : > { %436 = vmatmul.msk.bf16.vlgmr.msra.gmra.mxu0 %vm286_vm0, %v253_v14 }
  0x98   : > { %v299_v15 = vpop.f32.mrf.mxu0 }
  0x99   : > { %304 = vst [vmem:[%s231_s13] sm:$0xff] %v299_v15  ;;  %v314_v17 = vmul.f32 %v299_v15, %v299_v15 }
  0xa0   : > { %v301_v16 = vpop.f32.mrf.mxu0 }
  0xa1   : > { %305 = vst [vmem:[%s231_s13 + $0x8] sm:$0xff] %v301_v16  ;;  %v306_v18 = vadd.f32 %v301_v16, %v299_v15  ;;  %v315_v19 = vmul.f32 %v301_v16, %v301_v16 }
  0xa3   : > { %v307_v20 = vrot.slane %v306_v18, 4  ;;  %v316_v21 = vadd.f32 %v315_v19, %v314_v17 }
  0xa5   : > { %v308_v22 = vadd.f32 %v307_v20, %v306_v18  ;;  %v317_v23 = vrot.slane %v316_v21, 4 }
  0xa7   : > { %v309_v24 = vrot.slane %v308_v22, 2  ;;  %v318_v25 = vadd.f32 %v317_v23, %v316_v21 }
  0xa9   : > { %v310_v26 = vadd.f32 %v309_v24, %v308_v22  ;;  %v319_v27 = vrot.slane %v318_v25, 2 }
  0xab   : > { %v311_v28 = vrot.slane %v310_v26, 1  ;;  %v320_v29 = vadd.f32 %v319_v27, %v318_v25 }
  0xad   : > { %v312_v30 = vadd.f32 %v311_v28, %v310_v26  ;;  %v321_v31 = vrot.slane %v320_v29, 1 }
  0xaf   : > { %313 = vst [vmem:[%s235_s17] sm:$0x1] %v312_v30  ;;  %v322_v32 = vadd.f32 %v321_v31, %v320_v29 }
  0xb1   : > { %323 = vst [vmem:[%s235_s17 + $0x1] sm:$0x1] %v322_v32 }
  0xb2 PF: > { %s16_s18 = sadd.s32 1, %s461_s18  }
  0xb3   : > { %p13_p4 = scmp.ge.s32.totalorder %s16_s18, 4  }
  0xb5   :  { %15 = sbr.rel (!%p13_p4) target bundleno = 1 (0x1), region = 78 }

// kernel: block_forward.3
= control target key start
LH: loop header
LB: loop body
LE: loop exit
PB: predicated region body
PF: predicated region fallthrough
CT: control target
= control target key end

     0   :  { %s547_s12 = smov 0   ;;  %s637_s0 = inlined_call_operand.vmem [shape: f32[2,16,64], index: 0, kind: input, shape index: {}]   ;;  %s638_s1 = inlined_call_operand.vmem [shape: f32[9,64], index: 1, kind: input, shape index: {}]   ;;  %s639_s2 = inlined_call_operand.vmem [shape: f32[2,16,64], index: 2, kind: output, shape index: {0}]   ;;  %s640_s3 = inlined_call_operand.vmem [shape: f32[2,2,64], index: 3, kind: output, shape index: {1}]  }
   0x1 LB: > { %s486_s13 = sadd.s32 4294967295, %s520_s12   ;;  %p490_p0 = scmp.ge.s32.totalorder %s520_s12, 1  ;;  %s520_s12 = sphi %s547_s12, %s14_s12  }
   0x2   : > { %p140_p1 = scmp.lt.s32.totalorder %s520_s12, 3 }
   0x4   : > { %p141_p2 = pnand %p490_p0, %p140_p1 }
   0x5   : > { %p168_p3 = scmp.lt.s32.totalorder (!%p141_p2), %s486_s13, 1  ;;  %s522_s16 = smov (!%p141_p2), 4  }
   0x6   : > { %144 = sbr.rel (%p141_p2) target bundleno = 307 (0x133), region = 28  ;;  %s523_s21 = smov (!%p141_p2), 8  }
   0x7   : > { %s525_s24 = smov (!%p141_p2), 120   ;;  %s526_s25 = smov (!%p141_p2), 124  }
   0xb   : > { %v558_v0 = vld [vmem:[%s638_s1] sm:$0xff]  ;;  %s642_s13 = smov (!%p168_p3, %s486_s13), 1  ;;  %v513_v7 = vld [vmem:[%s638_s1 + $0x8] ss:$0 sm:$0xff]  ;;  %vm182_vm0 = vcmask 588800   ;;  %v524_v9 = vmov 0.0  }
   0xc   : > { %v210_v1 = vperm.slane %v558_v0, 1  ;;  %v261_v2 = vperm.slane %v558_v0, 4  ;;  %s498_s17 = sshll.u32 %s642_s13, 4  ;;  %v227_v4 = vperm.slane %v558_v0, 2  ;;  %v285_v5 = vperm.slane %v558_v0, 5  ;;  %183 = vst.msk [vmem:[#allocation2] sm:$0xff] %vm182_vm0, %v524_v9 }
   0xd   : > { %s172_s20 = scalar_lea.vmem %s637_s0, %s498_s17  ;;  %v326_v8 = vperm.slane %v558_v0, 7  ;;  %184 = vst.msk [vmem:[#allocation2 + $0x8] sm:$0xff] %vm182_vm0, %v524_v9  ;;  %vm185_vm1 = vcmask 582656   ;;  %vm197_vm2 = vcmask 556064   ;;  %v244_v22 = vperm.slane %v558_v0, 3  ;;  %s177_s28 = scalar_lea.vmem %s639_s2, %s498_s17 }
   0xe   : > { %212 = vrot.lane.b32.xlu1 %v210_v1, %s522_s16  ;;  %263 = vrot.lane.b32.xlu2 %v261_v2, %s522_s16  ;;  %v187_v3 = vld [vmem:[%s172_s20] sm:$0xff]  ;;  %v188_v6 = vld [vmem:[%s172_s20 + $0x8] sm:$0xff]  ;;  %186 = vst.msk [vmem:[#allocation2 + $0x10] sm:$0x3] %vm185_vm1, %v524_v9  ;;  %v309_v23 = vperm.slane %v558_v0, 6  ;;  %vm251_vm3 = vcmask 1046528  }
   0xf   : > { %191 = vrot.lane.b32.xlu0 %v187_v3, %s522_s16  ;;  %vm316_vm4 = vcmask 1045504   ;;  %vm374_vm5 = vcmask 523264   ;;  %s495_s29 = sshll.u32 %s642_s13, 1  ;;  %vm386_vm6 = vcmask 516096  }
  0x10   : > { %s181_s5 = scalar_lea.vmem %s640_s3, %s495_s29 }
  0x16   : > { %229 = vrot.lane.b32.xlu1 %v227_v4, %s523_s21  ;;  %287 = vrot.lane.b32.xlu2 %v285_v5, %s523_s21 }
  0x17   : > { %193 = vrot.lane.b32.xlu0 %v188_v6, %s522_s16 }
  0x1e   : > { %352 = vrot.lane.b32.xlu1 %v513_v7, %s523_s21 }
  0x1f   : > { %328 = vrot.lane.b32.xlu0 %v326_v8, %s522_s16 }
  0x68   : > { %v264_v12 = vpop.permute.xlu2 %263 }
  0x70   : > { %v288_v18 = vpop.permute.xlu2 %287 }
  0x80   : > { %v213_v10 = vpop.permute.xlu1 %212 }
  0x81   : > { %v192_v11 = vpop.permute.xlu0 %191 }
  0x82   : > { %198 = vst.msk [vmem:[#allocation2 + $0x1] sm:$0xff] %vm197_vm2, %v192_v11 }
  0x88   : > { %v230_v13 = vpop.permute.xlu1 %229 }
  0x89   : > { %v576_v14 = vld [vmem:[#allocation2] sm:$0xff]  ;;  %v194_v15 = vpop.permute.xlu0 %193 }
  0x8a   : > { %v232_v16 = vmul.f32 %v230_v13, %v576_v14  ;;  %199 = vst.msk [vmem:[#allocation2 + $0x9] sm:$0xff] %vm197_vm2, %v194_v15  ;;  %v215_v17 = vmul.f32 %v213_v10, %v576_v14  ;;  %v290_v20 = vmul.f32 %v288_v18, %v576_v14  ;;  %v266_v27 = vmul.f32 %v264_v12, %v576_v14 }
  0x8b   : > { %v245_v32 = vmul.f32 %v244_v22, %v576_v14  ;;  %v310_v33 = vmul.f32 %v309_v23, %v576_v14 }
  0x8c   : > { %236 = vrot.lane.b32.xlu1 %v232_v16, %s525_s24  ;;  %219 = vrot.lane.b32.xlu2 %v215_v17, %s526_s25  ;;  %v296_v34 = vrot.slane %v290_v20, 1  ;;  %v272_v36 = vrot.slane %v266_v27, 1 }
  0x8d   : > { %v252_v47 = vrot.slane %v245_v32, 1  ;;  %v317_v48 = vrot.slane %v310_v33, 2 }
  0x90   : > { %v353_v61 = vpop.permute.xlu1 %352 }
  0x91   : > { %v582_v19 = vld [vmem:[#allocation2 + $0x8] sm:$0xff]  ;;  %v204_v21 = vld [vmem:[#allocation2 + $0x10] sm:$0x3]  ;;  %v329_v28 = vpop.permute.xlu0 %328  ;;  %v355_v8 = vmul.f32 %v353_v61, %v576_v14 }
  0x92   : > { %v233_v24 = vmul.f32 %v230_v13, %v582_v19  ;;  %v216_v25 = vmul.f32 %v213_v10, %v582_v19  ;;  %v267_v26 = vmul.f32 %v264_v12, %v582_v19  ;;  %v268_v29 = vmul.f32 %v264_v12, %v204_v21 }
  0x93   : > { %v291_v31 = vmul.f32 %v288_v18, %v582_v19  ;;  %v331_v37 = vmul.f32 %v329_v28, %v576_v14  ;;  %v247_v39 = vmul.f32 %v244_v22, %v204_v21  ;;  %v246_v40 = vmul.f32 %v244_v22, %v582_v19 }
  0x94   : > { %238 = vrot.lane.b32.xlu2 %v233_v24, %s525_s24  ;;  %221 = vrot.lane.b32.xlu0 %v216_v25, %s526_s25  ;;  %v273_v30 = vrot.slane %v267_v26, 1  ;;  %v275_v35 = vrot.slane %v268_v29, 1  ;;  %v332_v41 = vmul.f32 %v329_v28, %v582_v19  ;;  %v311_v43 = vmul.f32 %v309_v23, %v582_v19 }
  0x95   : > { %v297_v38 = vrot.slane %v291_v31, 1  ;;  %v312_v44 = vmul.f32 %v309_v23, %v204_v21  ;;  %v255_v45 = vrot.slane %v247_v39, 1  ;;  %v253_v46 = vrot.slane %v246_v40, 1 }
  0x96   : > { %v276_v42 = vsel %vm251_vm3, %v273_v30, %v275_v35  ;;  %v333_v49 = vmul.f32 %v329_v28, %v204_v21  ;;  %v292_v50 = vmul.f32 %v288_v18, %v204_v21  ;;  %v318_v51 = vrot.slane %v311_v43, 2 }
  0x97   : > { %279 = vrot.lane.b32.xlu1 %v276_v42, %s526_s25  ;;  %v320_v52 = vrot.slane %v312_v44, 2  ;;  %v298_v53 = vsel %vm251_vm3, %v296_v34, %v297_v38  ;;  %v274_v54 = vsel %vm251_vm3, %v272_v36, %v273_v30  ;;  %v256_v55 = vsel %vm251_vm3, %v253_v46, %v255_v45 }
  0x98   : > { %v254_v56 = vsel %vm251_vm3, %v252_v47, %v253_v46  ;;  %v337_v57 = vrot.slane %v331_v37, 2  ;;  %v338_v58 = vrot.slane %v332_v41, 2  ;;  %v319_v59 = vsel %vm316_vm4, %v317_v48, %v318_v51 }
  0x99   : > { %v321_v60 = vsel %vm316_vm4, %v318_v51, %v320_v52  ;;  %v340_v62 = vrot.slane %v333_v49, 2  ;;  %v299_v63 = vrot.slane %v292_v50, 1  ;;  %v356_v1 = vmul.f32 %v353_v61, %v582_v19 }
  0x9a   : > { %v357_v2 = vmul.f32 %v353_v61, %v204_v21  ;;  %v339_v3 = vsel %vm316_vm4, %v337_v57, %v338_v58  ;;  %v361_v10 = vrot.slane %v355_v8, 2  ;;  %v205_v12 = vperm.slane %v558_v0, 0 }
  0x9b   : > { %v300_v4 = vsel %vm251_vm3, %v297_v38, %v299_v63  ;;  %v341_v5 = vsel %vm316_vm4, %v338_v58, %v340_v62  ;;  %v362_v6 = vrot.slane %v356_v1, 2 }
  0x9c   : > { %301 = vrot.lane.b32.xlu2 %v298_v53, %s525_s24  ;;  %277 = vrot.lane.b32.xlu0 %v274_v54, %s526_s25  ;;  %v364_v7 = vrot.slane %v357_v2, 2  ;;  %v206_v15 = vmul.f32 %v205_v12, %v576_v14  ;;  %v207_v21 = vmul.f32 %v205_v12, %v582_v19 }
  0x9d   : > { %v363_v11 = vsel %vm316_vm4, %v361_v10, %v362_v6 }
  0x9e   : > { %v365_v9 = vsel %vm316_vm4, %v362_v6, %v364_v7 }
  0x9f   : > { %342 = vrot.lane.b32.xlu1 %v339_v3, %s526_s25 }
  0xa4   : > { %303 = vrot.lane.b32.xlu0 %v300_v4, %s525_s24  ;;  %344 = vrot.lane.b32.xlu2 %v341_v5, %s526_s25 }
  0xa7   : > { %368 = vrot.lane.b32.xlu1 %v365_v9, %s525_s24 }
  0xac   : > { %366 = vrot.lane.b32.xlu0 %v363_v11, %s525_s24 }
  0xe6   : > { %v220_v13 = vpop.permute.xlu2 %219 }
  0xe7   : > { %v225_v16 = vadd.f32 %v220_v13, %v206_v15 }
  0xee   : > { %v239_v22 = vpop.permute.xlu2 %238 }
  0xf6   : > { %v302_v30 = vpop.permute.xlu2 %301 }
  0xfe   : > { %v237_v17 = vpop.permute.xlu1 %236  ;;  %v345_v36 = vpop.permute.xlu2 %344 }
  0xff   : > { %v242_v18 = vadd.f32 %v237_v17, %v225_v16 }
 0x101   : > { %v259_v20 = vadd.f32 %v254_v56, %v242_v18 }
 0x106   : > { %v222_v23 = vpop.permute.xlu0 %221 }
 0x107   : > { %v226_v24 = vadd.f32 %v222_v23, %v207_v21 }
 0x109   : > { %v243_v25 = vadd.f32 %v239_v22, %v226_v24  ;;  %v280_v26 = vpop.permute.xlu1 %279 }
 0x10b   : > { %v260_v27 = vadd.f32 %v256_v55, %v243_v25 }
 0x10d   : > { %v284_v14 = vadd.f32 %v280_v26, %v260_v27 }
 0x10e   : > { %v278_v28 = vpop.permute.xlu0 %277 }
 0x10f   : > { %v283_v29 = vadd.f32 %v278_v28, %v259_v20 }
 0x111   : > { %v307_v0 = vadd.f32 %v302_v30, %v283_v29  ;;  %v343_v31 = vpop.permute.xlu1 %342 }
 0x113   : > { %v324_v32 = vadd.f32 %v319_v59, %v307_v0 }
 0x115   : > { %v348_v38 = vadd.f32 %v343_v31, %v324_v32 }
 0x116   : > { %v304_v33 = vpop.permute.xlu0 %303 }
 0x117   : > { %v308_v34 = vadd.f32 %v304_v33, %v284_v14 }
 0x119   : > { %v325_v35 = vadd.f32 %v321_v60, %v308_v34  ;;  %v369_v19 = vpop.permute.xlu1 %368 }
 0x11b   : > { %v349_v37 = vadd.f32 %v345_v36, %v325_v35 }
 0x11d   : > { %v373_v39 = vadd.f32 %v369_v19, %v349_v37 }
 0x11e   : > { %v367_v40 = vpop.permute.xlu0 %366 }
 0x11f   : > { %376 = vst.msk [vmem:[%s177_s28 + $0x8] sm:$0xff] %vm374_vm5, %v373_v39  ;;  %v389_v41 = vmul.f32 %v373_v39, %v373_v39  ;;  %v372_v42 = vadd.f32 %v367_v40, %v348_v38  ;;  %v378_v43 = vsel %vm374_vm5, %v373_v39, 0.0 }
 0x121   : > { %375 = vst.msk [vmem:[%s177_s28] sm:$0xff] %vm374_vm5, %v372_v42  ;;  %v377_v44 = vsel %vm374_vm5, %v372_v42, 0.0  ;;  %v388_v45 = vmul.f32 %v372_v42, %v372_v42  ;;  %v391_v47 = vsel %vm374_vm5, %v389_v41, 0.0 }
 0x122   : > { %v379_v46 = vadd.f32 %v378_v43, %v377_v44 }
 0x123   : > { %v390_v48 = vsel %vm374_vm5, %v388_v45, 0.0 }
 0x124   : > { %v380_v49 = vrot.slane %v379_v46, 4  ;;  %v392_v50 = vadd.f32 %v391_v47, %v390_v48 }
 0x126   : > { %v381_v51 = vadd.f32 %v380_v49, %v379_v46  ;;  %v393_v52 = vrot.slane %v392_v50, 4 }
 0x128   : > { %v382_v53 = vrot.slane %v381_v51, 2  ;;  %v394_v54 = vadd.f32 %v393_v52, %v392_v50 }
 0x12a   : > { %v383_v55 = vadd.f32 %v382_v53, %v381_v51  ;;  %v395_v56 = vrot.slane %v394_v54, 2 }
 0x12c   : > { %v384_v57 = vrot.slane %v383_v55, 1  ;;  %v396_v58 = vadd.f32 %v395_v56, %v394_v54 }
 0x12e   : > { %v385_v59 = vadd.f32 %v384_v57, %v383_v55  ;;  %v397_v60 = vrot.slane %v396_v58, 1 }
 0x130   : > { %387 = vst.msk [vmem:[%s181_s5] sm:$0x1] %vm386_vm6, %v385_v59  ;;  %v398_v61 = vadd.f32 %v397_v60, %v396_v58 }
 0x132   : > { %399 = vst.msk [vmem:[%s181_s5 + $0x1] sm:$0x1] %vm386_vm6, %v398_v61 }
 0x133 PF: > { %s14_s12 = sadd.s32 1, %s520_s12  }
 0x134   : > { %p11_p4 = scmp.ge.s32.totalorder %s14_s12, 4  }
 0x136   :  { %13 = sbr.rel (!%p11_p4) target bundleno = 1 (0x1), region = 70 }

// kernel: block_forward.5
= control target key start
LH: loop header
LB: loop body
LE: loop exit
PB: predicated region body
PF: predicated region fallthrough
CT: control target
= control target key end

     0   :  { %s295_s12 = smov 0   ;;  %s312_s0 = inlined_call_operand.vmem [shape: f32[2,16,128], index: 0, kind: input, shape index: {}]   ;;  %s313_s1 = inlined_call_operand.vmem [shape: f32[1,128], index: 1, kind: input, shape index: {}]   ;;  %s314_s2 = inlined_call_operand.vmem [shape: f32[1,128], index: 2, kind: input, shape index: {}]   ;;  %s315_s3 = inlined_call_operand.vmem [shape: f32[2,16,128], index: 3, kind: output, shape index: {}]  }
   0x1 LB: > { %s244_s13 = sadd.s32 4294967295, %s273_s12   ;;  %p248_p0 = scmp.ge.s32.totalorder %s273_s12, 1  ;;  %s273_s12 = sphi %s295_s12, %s13_s12  }
   0x2   : > { %p137_p1 = scmp.lt.s32.totalorder %s273_s12, 3 }
   0x4   : > { %p138_p2 = pnand %p248_p0, %p137_p1 }
   0x5   : > { %p161_p3 = scmp.lt.s32.totalorder (!%p138_p2), %s244_s13, 1 }
   0x6   : > { %141 = sbr.rel (%p138_p2) target bundleno = 23 (0x17), region = 32 }
   0xb   : > { %s317_s13 = smov (!%p161_p3, %s244_s13), 1  ;;  %v265_v0 = vld [vmem:[%s313_s1] ss:$0 sm:$0xff] }
   0xc   : > { %s255_s16 = sshll.u32 %s317_s13, 4  ;;  %v266_v1 = vld [vmem:[%s314_s2] ss:$0 sm:$0xff] }
   0xd   : > { %s165_s19 = scalar_lea.vmem %s312_s0, %s255_s16  ;;  %s170_s24 = scalar_lea.vmem %s315_s3, %s255_s16 }
   0xe   : > { %v171_v2 = vld [vmem:[%s165_s19] sm:$0xff]  ;;  %v172_v3 = vld [vmem:[%s165_s19 + $0x8] sm:$0xff] }
   0xf   : > { %v177_v4 = vmul.f32 %v265_v0, %v171_v2  ;;  %v178_v5 = vmul.f32 %v265_v0, %v172_v3 }
  0x11   : > { %v183_v6 = vadd.f32 %v266_v1, %v177_v4  ;;  %v184_v7 = vadd.f32 %v266_v1, %v178_v5 }
  0x13   : > { %v185_v8 = vmax.f32 %v183_v6, 0.0  ;;  %v186_v9 = vmax.f32 %v184_v7, 0.0 }
  0x15   : > { %187 = vst [vmem:[%s170_s24] sm:$0xff] %v185_v8 }
  0x16   : > { %188 = vst [vmem:[%s170_s24 + $0x8] sm:$0xff] %v186_v9 }
  0x17 PF: > { %s13_s12 = sadd.s32 1, %s273_s12  }
  0x18   : > { %p10_p4 = scmp.ge.s32.totalorder %s13_s12, 4  }
  0x1a   :  { %12 = sbr.rel (!%p10_p4) target bundleno = 1 (0x1), region = 62 }

</bundles_post_ra>
